<compile_context>
chip_gen: v7x
topology: tpu7x:2x2x1
jax: 0.10.0
libtpu: 0.0.40
codegen_flags: <defaults>
</compile_context>

<pallas_src>
import functools

import jax
import jax.numpy as jnp
from jax.experimental import pallas as pl
from jax.experimental.pallas import tpu as pltpu

_LANE = 128
_SUBLANE = 8
_MAX_BLOCK_ROWS = 2048   # (2048, 128) f32 tile = 1 MiB per stream buffer
_MIN_SEG = 8             # lower bound on segment width -> unrolled loop <= 16


def _round_up(x, m):
    return ((x + m - 1) // m) * m


def _next_pow2(x):
    return 1 << (x - 1).bit_length()


def cac1_kernel(v_ref, e_ref, p_ref, v_out_ref, e_out_ref, *, pack):
    """One Cross-And-Compress unit on lane-packed (rows, lane_width) tiles.

    Each lane row holds `pack` batch rows (segments of width d_pad).
    Parameter slab rows (pre-tiled / pre-masked / pre-summed in wrapper):
      [0 .. pack-1]        : (w_vv + w_ev) masked to segment t
      [pack .. 2*pack-1]   : (w_ve + w_vv) masked to segment t
      [2*pack .. 3*pack-1] : 0/1 mask of segment t
      [3*pack]             : b_v tiled across segments
      [3*pack + 1]         : b_e tiled across segments
    """
    v = v_ref[...].astype(jnp.float32)   # (bm, L)
    e = e_ref[...].astype(jnp.float32)   # (bm, L)

    sv = jnp.zeros_like(v)
    se = jnp.zeros_like(v)
    for t in range(pack):  # static, small (<= 16) unrolled loop
        wv_m = p_ref[t, :]              # (L,) masked (w_vv + w_ev)
        we_m = p_ref[pack + t, :]       # (L,) masked (w_ve + w_vv)
        m_t = p_ref[2 * pack + t, :]    # (L,) segment mask
        # C @ w == e * (v . w): segmented dot product via masked weights +
        # full-lane reduce (VPU multiply, XLU reduce -> off the critical VPU
        # slot), then broadcast the scalar back onto the segment lanes.
        s_v_t = jnp.sum(v * wv_m[None, :], axis=-1, keepdims=True)  # (bm, 1)
        s_e_t = jnp.sum(v * we_m[None, :], axis=-1, keepdims=True)  # (bm, 1)
        sv = sv + s_v_t * m_t[None, :]
        se = se + s_e_t * m_t[None, :]

    b_v = p_ref[3 * pack, :]
    b_e = p_ref[3 * pack + 1, :]
    v_out_ref[...] = (e * sv + b_v[None, :]).astype(v_out_ref.dtype)
    e_out_ref[...] = (e * se + b_e[None, :]).astype(e_out_ref.dtype)


def cac1_forward(v, e, w_vv, w_ev, w_ve, b_v, b_e):
    """Pallas forward for CAC1.  v, e: (B, 1, D); weights/biases: (D, 1)."""
    B, _, D = v.shape

    # ---- lane packing geometry ------------------------------------------
    if D <= _LANE:
        d_pad = max(_MIN_SEG, _next_pow2(D))   # power of two -> divides 128
    else:
        d_pad = _round_up(D, _LANE)
    pack = max(1, _LANE // d_pad)
    lane_width = pack * d_pad

    rows = pl.cdiv(B, pack)        # packed rows
    b_slots = rows * pack          # batch slots after (minimal) row padding

    if rows <= 2 * _SUBLANE:
        block_rows = rows          # single full-extent block (always legal)
    else:
        # >= 2 blocks so both v7x TensorCores get work; multiple of 8 rows.
        block_rows = min(_MAX_BLOCK_ROWS,
                         _round_up(pl.cdiv(rows, 2), _SUBLANE))
    grid = (pl.cdiv(rows, block_rows),)   # ragged final block handled by Pallas

    needs_pad = (b_slots != B) or (d_pad != D)

    # ---- pack inputs ------------------------------------------------------
    # Free row-major reshape when no padding is needed; otherwise a single
    # fused pad (zeros in the ragged tail / feature tail).
    def pack_arr(x):
        x2 = x.reshape(B, D)
        if needs_pad:
            x2 = jnp.pad(x2, ((0, b_slots - B), (0, d_pad - D)))
        return x2.reshape(rows, lane_width)

    v_p = pack_arr(v)
    e_p = pack_arr(e)

    # ---- resident parameter slab (folded sums, masks, tiled biases) -------
    def fold(w):
        w1 = w.reshape(D).astype(jnp.float32)
        return jnp.pad(w1, (0, d_pad - D)) if d_pad != D else w1

    w_v_sum = fold(w_vv) + fold(w_ev)                    # (d_pad,)
    w_e_sum = fold(w_ve) + fold(w_vv)                    # (d_pad,)
    seg_id = jnp.arange(lane_width) // d_pad
    masks = (seg_id[None, :] == jnp.arange(pack)[:, None]).astype(jnp.float32)
    wv_rows = jnp.tile(w_v_sum, pack)[None, :] * masks   # (pack, L)
    we_rows = jnp.tile(w_e_sum, pack)[None, :] * masks   # (pack, L)
    bias_rows = jnp.stack([jnp.tile(fold(b_v), pack),
                           jnp.tile(fold(b_e), pack)])    # (2, L)
    params = jnp.concatenate([wv_rows, we_rows, masks, bias_rows], axis=0)
    n_rows = 3 * pack + 2

    row_spec = pl.BlockSpec((block_rows, lane_width), lambda i: (i, 0))
    # Only alias when the packed buffers are fresh pad copies; aliasing a
    # reshape view of the caller's input would force XLA to insert a copy.
    io_alias = {0: 0, 1: 1} if needs_pad else {}

    vo, eo = pl.pallas_call(
        functools.partial(cac1_kernel, pack=pack),
        out_shape=(jax.ShapeDtypeStruct((rows, lane_width), v.dtype),
                   jax.ShapeDtypeStruct((rows, lane_width), e.dtype)),
        grid_spec=pltpu.PrefetchScalarGridSpec(
            num_scalar_prefetch=0,
            grid=grid,
            in_specs=[
                row_spec,
                row_spec,
                pl.BlockSpec((n_rows, lane_width), lambda i: (0, 0)),  # resident
            ],
            out_specs=[row_spec, row_spec],
        ),
        compiler_params=pltpu.CompilerParams(
            dimension_semantics=("parallel",),
            vmem_limit_bytes=64 * 1024 * 1024),
        input_output_aliases=io_alias,
    )(v_p, e_p, params)

    def unpack(x):
        x2 = x.reshape(b_slots, d_pad)
        if needs_pad:
            x2 = x2[:B, :D]
        return x2.reshape(B, 1, D)

    return unpack(vo), unpack(eo)


def cac1_reference(v, e, w_vv, w_ev, w_ve, b_v, b_e):
    """Literal translation of the PyTorch forward (for verification)."""
    B, _, D = v.shape
    hp = jax.lax.Precision.HIGHEST
    C = jnp.matmul(e.reshape(B, D, 1), v, precision=hp)              # (B, D, D)
    v_new = (jnp.matmul(C, w_vv, precision=hp)
             + jnp.matmul(C, w_ev, precision=hp) + b_v)              # (B, D, 1)
    e_new = (jnp.matmul(C, w_ve, precision=hp)
             + jnp.matmul(C, w_vv, precision=hp) + b_e)              # (B, D, 1)
    return v_new.reshape(B, 1, D), e_new.reshape(B, 1, D)


def _run_case(key, B, D):
    kv, ke, k1, k2, k3, k4, k5 = jax.random.split(key, 7)
    v = jax.random.normal(kv, (B, 1, D), dtype=jnp.float32)
    e = jax.random.normal(ke, (B, 1, D), dtype=jnp.float32)
    w_vv = jax.random.normal(k1, (D, 1), dtype=jnp.float32)
    w_ev = jax.random.normal(k2, (D, 1), dtype=jnp.float32)
    w_ve = jax.random.normal(k3, (D, 1), dtype=jnp.float32)
    b_v = jax.random.normal(k4, (D, 1), dtype=jnp.float32)
    b_e = jax.random.normal(k5, (D, 1), dtype=jnp.float32)

    v_ref_out, e_ref_out = cac1_reference(v, e, w_vv, w_ev, w_ve, b_v, b_e)
    v_out, e_out = cac1_forward(v, e, w_vv, w_ev, w_ve, b_v, b_e)
    jax.block_until_ready((v_out, e_out))

    assert v_out.shape == (B, 1, D) and e_out.shape == (B, 1, D)
    assert jnp.allclose(v_out, v_ref_out, atol=1e-4, rtol=1e-4)
    assert jnp.allclose(e_out, e_ref_out, atol=1e-4, rtol=1e-4)


if __name__ == "__main__":
    key = jax.random.PRNGKey(0)
    k_a, k_b = jax.random.split(key)

    # Zero-copy packing path (B divisible by pack, D a power of two).
    _run_case(k_a, B=8, D=32)
    # Ragged-B / non-power-of-two-D padding path.
    _run_case(k_b, B=7, D=24)

    print("KERNEL_OK")
</pallas_src>

<mosaic_0001>
module attributes {stable_mosaic.version = 11 : i64} {
  func.func @cac1_kernel(%arg0: i32, %arg1: memref<2x128xf32, #tpu.memory_space<vmem>>, %arg2: memref<2x128xf32, #tpu.memory_space<vmem>>, %arg3: memref<14x128xf32, #tpu.memory_space<vmem>>, %arg4: memref<2x128xf32, #tpu.memory_space<vmem>>, %arg5: memref<2x128xf32, #tpu.memory_space<vmem>>) attributes {dimension_semantics = [#tpu.dimension_semantics<parallel>], iteration_bounds = array<i64: 1>, scalar_prefetch = 0 : i64, scratch_operands = 0 : i64, tpu.core_type = #tpu.core_type<tc>, window_params = [{transform_indices = @transform_0, window_bounds = array<i64: 2, 128>}, {transform_indices = @transform_1, window_bounds = array<i64: 2, 128>}, {pipeline_mode = #tpu.pipeline_mode<synchronous>, transform_indices = @transform_2, window_bounds = array<i64: 14, 128>}, {transform_indices = @transform_3, window_bounds = array<i64: 2, 128>}, {transform_indices = @transform_4, window_bounds = array<i64: 2, 128>}]} {
    %c0 = arith.constant 0 : index
    %c0_0 = arith.constant 0 : index
    %0 = vector.load %arg1[%c0, %c0_0] : memref<2x128xf32, #tpu.memory_space<vmem>>, vector<2x128xf32>
    %c0_1 = arith.constant 0 : index
    %c0_2 = arith.constant 0 : index
    %1 = vector.load %arg2[%c0_1, %c0_2] : memref<2x128xf32, #tpu.memory_space<vmem>>, vector<2x128xf32>
    %cst = arith.constant 0.000000e+00 : f32
    %2 = vector.broadcast %cst : f32 to vector<2x128xf32>
    %cst_3 = arith.constant 0.000000e+00 : f32
    %3 = vector.broadcast %cst_3 : f32 to vector<2x128xf32>
    %c0_4 = arith.constant 0 : index
    %c0_5 = arith.constant 0 : index
    %4 = vector.load %arg3[%c0_4, %c0_5] : memref<14x128xf32, #tpu.memory_space<vmem>>, vector<1x128xf32>
    %5 = vector.shape_cast %4 : vector<1x128xf32> to vector<128xf32>
    %c4 = arith.constant 4 : index
    %c0_6 = arith.constant 0 : index
    %6 = vector.load %arg3[%c4, %c0_6] : memref<14x128xf32, #tpu.memory_space<vmem>>, vector<1x128xf32>
    %7 = vector.shape_cast %6 : vector<1x128xf32> to vector<128xf32>
    %c8 = arith.constant 8 : index
    %c0_7 = arith.constant 0 : index
    %8 = vector.load %arg3[%c8, %c0_7] : memref<14x128xf32, #tpu.memory_space<vmem>>, vector<1x128xf32>
    %9 = vector.shape_cast %8 : vector<1x128xf32> to vector<128xf32>
    %10 = vector.shape_cast %5 : vector<128xf32> to vector<1x128xf32>
    %11 = vector.broadcast %10 : vector<1x128xf32> to vector<2x128xf32>
    %12 = arith.mulf %0, %11 : vector<2x128xf32>
    %cst_8 = arith.constant dense<0.000000e+00> : vector<2xf32>
    %13 = vector.multi_reduction <add>, %12, %cst_8 [1] : vector<2x128xf32> to vector<2xf32>
    %14 = vector.shape_cast %13 : vector<2xf32> to vector<2x1xf32>
    %15 = vector.shape_cast %7 : vector<128xf32> to vector<1x128xf32>
    %16 = vector.broadcast %15 : vector<1x128xf32> to vector<2x128xf32>
    %17 = arith.mulf %0, %16 : vector<2x128xf32>
    %cst_9 = arith.constant dense<0.000000e+00> : vector<2xf32>
    %18 = vector.multi_reduction <add>, %17, %cst_9 [1] : vector<2x128xf32> to vector<2xf32>
    %19 = vector.shape_cast %18 : vector<2xf32> to vector<2x1xf32>
    %20 = vector.shape_cast %9 : vector<128xf32> to vector<1x128xf32>
    %21 = vector.broadcast %14 : vector<2x1xf32> to vector<2x128xf32>
    %22 = vector.broadcast %20 : vector<1x128xf32> to vector<2x128xf32>
    %23 = arith.mulf %21, %22 : vector<2x128xf32>
    %24 = arith.addf %2, %23 : vector<2x128xf32>
    %25 = vector.shape_cast %9 : vector<128xf32> to vector<1x128xf32>
    %26 = vector.broadcast %19 : vector<2x1xf32> to vector<2x128xf32>
    %27 = vector.broadcast %25 : vector<1x128xf32> to vector<2x128xf32>
    %28 = arith.mulf %26, %27 : vector<2x128xf32>
    %29 = arith.addf %3, %28 : vector<2x128xf32>
    %c1 = arith.constant 1 : index
    %c0_10 = arith.constant 0 : index
    %30 = vector.load %arg3[%c1, %c0_10] : memref<14x128xf32, #tpu.memory_space<vmem>>, vector<1x128xf32>
    %31 = vector.shape_cast %30 : vector<1x128xf32> to vector<128xf32>
    %c5 = arith.constant 5 : index
    %c0_11 = arith.constant 0 : index
    %32 = vector.load %arg3[%c5, %c0_11] : memref<14x128xf32, #tpu.memory_space<vmem>>, vector<1x128xf32>
    %33 = vector.shape_cast %32 : vector<1x128xf32> to vector<128xf32>
    %c9 = arith.constant 9 : index
    %c0_12 = arith.constant 0 : index
    %34 = vector.load %arg3[%c9, %c0_12] : memref<14x128xf32, #tpu.memory_space<vmem>>, vector<1x128xf32>
    %35 = vector.shape_cast %34 : vector<1x128xf32> to vector<128xf32>
    %36 = vector.shape_cast %31 : vector<128xf32> to vector<1x128xf32>
    %37 = vector.broadcast %36 : vector<1x128xf32> to vector<2x128xf32>
    %38 = arith.mulf %0, %37 : vector<2x128xf32>
    %cst_13 = arith.constant dense<0.000000e+00> : vector<2xf32>
    %39 = vector.multi_reduction <add>, %38, %cst_13 [1] : vector<2x128xf32> to vector<2xf32>
    %40 = vector.shape_cast %39 : vector<2xf32> to vector<2x1xf32>
    %41 = vector.shape_cast %33 : vector<128xf32> to vector<1x128xf32>
    %42 = vector.broadcast %41 : vector<1x128xf32> to vector<2x128xf32>
    %43 = arith.mulf %0, %42 : vector<2x128xf32>
    %cst_14 = arith.constant dense<0.000000e+00> : vector<2xf32>
    %44 = vector.multi_reduction <add>, %43, %cst_14 [1] : vector<2x128xf32> to vector<2xf32>
    %45 = vector.shape_cast %44 : vector<2xf32> to vector<2x1xf32>
    %46 = vector.shape_cast %35 : vector<128xf32> to vector<1x128xf32>
    %47 = vector.broadcast %40 : vector<2x1xf32> to vector<2x128xf32>
    %48 = vector.broadcast %46 : vector<1x128xf32> to vector<2x128xf32>
    %49 = arith.mulf %47, %48 : vector<2x128xf32>
    %50 = arith.addf %24, %49 : vector<2x128xf32>
    %51 = vector.shape_cast %35 : vector<128xf32> to vector<1x128xf32>
    %52 = vector.broadcast %45 : vector<2x1xf32> to vector<2x128xf32>
    %53 = vector.broadcast %51 : vector<1x128xf32> to vector<2x128xf32>
    %54 = arith.mulf %52, %53 : vector<2x128xf32>
    %55 = arith.addf %29, %54 : vector<2x128xf32>
    %c2 = arith.constant 2 : index
    %c0_15 = arith.constant 0 : index
    %56 = vector.load %arg3[%c2, %c0_15] : memref<14x128xf32, #tpu.memory_space<vmem>>, vector<1x128xf32>
    %57 = vector.shape_cast %56 : vector<1x128xf32> to vector<128xf32>
    %c6 = arith.constant 6 : index
    %c0_16 = arith.constant 0 : index
    %58 = vector.load %arg3[%c6, %c0_16] : memref<14x128xf32, #tpu.memory_space<vmem>>, vector<1x128xf32>
    %59 = vector.shape_cast %58 : vector<1x128xf32> to vector<128xf32>
    %c10 = arith.constant 10 : index
    %c0_17 = arith.constant 0 : index
    %60 = vector.load %arg3[%c10, %c0_17] : memref<14x128xf32, #tpu.memory_space<vmem>>, vector<1x128xf32>
    %61 = vector.shape_cast %60 : vector<1x128xf32> to vector<128xf32>
    %62 = vector.shape_cast %57 : vector<128xf32> to vector<1x128xf32>
    %63 = vector.broadcast %62 : vector<1x128xf32> to vector<2x128xf32>
    %64 = arith.mulf %0, %63 : vector<2x128xf32>
    %cst_18 = arith.constant dense<0.000000e+00> : vector<2xf32>
    %65 = vector.multi_reduction <add>, %64, %cst_18 [1] : vector<2x128xf32> to vector<2xf32>
    %66 = vector.shape_cast %65 : vector<2xf32> to vector<2x1xf32>
    %67 = vector.shape_cast %59 : vector<128xf32> to vector<1x128xf32>
    %68 = vector.broadcast %67 : vector<1x128xf32> to vector<2x128xf32>
    %69 = arith.mulf %0, %68 : vector<2x128xf32>
    %cst_19 = arith.constant dense<0.000000e+00> : vector<2xf32>
    %70 = vector.multi_reduction <add>, %69, %cst_19 [1] : vector<2x128xf32> to vector<2xf32>
    %71 = vector.shape_cast %70 : vector<2xf32> to vector<2x1xf32>
    %72 = vector.shape_cast %61 : vector<128xf32> to vector<1x128xf32>
    %73 = vector.broadcast %66 : vector<2x1xf32> to vector<2x128xf32>
    %74 = vector.broadcast %72 : vector<1x128xf32> to vector<2x128xf32>
    %75 = arith.mulf %73, %74 : vector<2x128xf32>
    %76 = arith.addf %50, %75 : vector<2x128xf32>
    %77 = vector.shape_cast %61 : vector<128xf32> to vector<1x128xf32>
    %78 = vector.broadcast %71 : vector<2x1xf32> to vector<2x128xf32>
    %79 = vector.broadcast %77 : vector<1x128xf32> to vector<2x128xf32>
    %80 = arith.mulf %78, %79 : vector<2x128xf32>
    %81 = arith.addf %55, %80 : vector<2x128xf32>
    %c3 = arith.constant 3 : index
    %c0_20 = arith.constant 0 : index
    %82 = vector.load %arg3[%c3, %c0_20] : memref<14x128xf32, #tpu.memory_space<vmem>>, vector<1x128xf32>
    %83 = vector.shape_cast %82 : vector<1x128xf32> to vector<128xf32>
    %c7 = arith.constant 7 : index
    %c0_21 = arith.constant 0 : index
    %84 = vector.load %arg3[%c7, %c0_21] : memref<14x128xf32, #tpu.memory_space<vmem>>, vector<1x128xf32>
    %85 = vector.shape_cast %84 : vector<1x128xf32> to vector<128xf32>
    %c11 = arith.constant 11 : index
    %c0_22 = arith.constant 0 : index
    %86 = vector.load %arg3[%c11, %c0_22] : memref<14x128xf32, #tpu.memory_space<vmem>>, vector<1x128xf32>
    %87 = vector.shape_cast %86 : vector<1x128xf32> to vector<128xf32>
    %88 = vector.shape_cast %83 : vector<128xf32> to vector<1x128xf32>
    %89 = vector.broadcast %88 : vector<1x128xf32> to vector<2x128xf32>
    %90 = arith.mulf %0, %89 : vector<2x128xf32>
    %cst_23 = arith.constant dense<0.000000e+00> : vector<2xf32>
    %91 = vector.multi_reduction <add>, %90, %cst_23 [1] : vector<2x128xf32> to vector<2xf32>
    %92 = vector.shape_cast %91 : vector<2xf32> to vector<2x1xf32>
    %93 = vector.shape_cast %85 : vector<128xf32> to vector<1x128xf32>
    %94 = vector.broadcast %93 : vector<1x128xf32> to vector<2x128xf32>
    %95 = arith.mulf %0, %94 : vector<2x128xf32>
    %cst_24 = arith.constant dense<0.000000e+00> : vector<2xf32>
    %96 = vector.multi_reduction <add>, %95, %cst_24 [1] : vector<2x128xf32> to vector<2xf32>
    %97 = vector.shape_cast %96 : vector<2xf32> to vector<2x1xf32>
    %98 = vector.shape_cast %87 : vector<128xf32> to vector<1x128xf32>
    %99 = vector.broadcast %92 : vector<2x1xf32> to vector<2x128xf32>
    %100 = vector.broadcast %98 : vector<1x128xf32> to vector<2x128xf32>
    %101 = arith.mulf %99, %100 : vector<2x128xf32>
    %102 = arith.addf %76, %101 : vector<2x128xf32>
    %103 = vector.shape_cast %87 : vector<128xf32> to vector<1x128xf32>
    %104 = vector.broadcast %97 : vector<2x1xf32> to vector<2x128xf32>
    %105 = vector.broadcast %103 : vector<1x128xf32> to vector<2x128xf32>
    %106 = arith.mulf %104, %105 : vector<2x128xf32>
    %107 = arith.addf %81, %106 : vector<2x128xf32>
    %c12 = arith.constant 12 : index
    %c0_25 = arith.constant 0 : index
    %108 = vector.load %arg3[%c12, %c0_25] : memref<14x128xf32, #tpu.memory_space<vmem>>, vector<1x128xf32>
    %109 = vector.shape_cast %108 : vector<1x128xf32> to vector<128xf32>
    %c13 = arith.constant 13 : index
    %c0_26 = arith.constant 0 : index
    %110 = vector.load %arg3[%c13, %c0_26] : memref<14x128xf32, #tpu.memory_space<vmem>>, vector<1x128xf32>
    %111 = vector.shape_cast %110 : vector<1x128xf32> to vector<128xf32>
    %112 = arith.mulf %1, %102 : vector<2x128xf32>
    %113 = vector.shape_cast %109 : vector<128xf32> to vector<1x128xf32>
    %114 = vector.broadcast %113 : vector<1x128xf32> to vector<2x128xf32>
    %115 = arith.addf %112, %114 : vector<2x128xf32>
    %c0_27 = arith.constant 0 : index
    %c0_28 = arith.constant 0 : index
    %116 = vector.load %arg4[%c0_27, %c0_28] : memref<2x128xf32, #tpu.memory_space<vmem>>, vector<2x128xf32>
    tpu.vector_store %arg4[%c0_27, %c0_28], %115 {strides = array<i32>} : memref<2x128xf32, #tpu.memory_space<vmem>>, vector<2x128xf32>,
    %117 = arith.mulf %1, %107 : vector<2x128xf32>
    %118 = vector.shape_cast %111 : vector<128xf32> to vector<1x128xf32>
    %119 = vector.broadcast %118 : vector<1x128xf32> to vector<2x128xf32>
    %120 = arith.addf %117, %119 : vector<2x128xf32>
    %c0_29 = arith.constant 0 : index
    %c0_30 = arith.constant 0 : index
    %121 = vector.load %arg5[%c0_29, %c0_30] : memref<2x128xf32, #tpu.memory_space<vmem>>, vector<2x128xf32>
    tpu.vector_store %arg5[%c0_29, %c0_30], %120 {strides = array<i32>} : memref<2x128xf32, #tpu.memory_space<vmem>>, vector<2x128xf32>,
    return
  }
  func.func @transform_0(%arg0: i32) -> (i32, i32) {
    %c0_i32 = arith.constant 0 : i32
    %c0_i32_0 = arith.constant 0 : i32
    return %arg0, %c0_i32 : i32, i32
  }
  func.func @transform_1(%arg0: i32) -> (i32, i32) {
    %c0_i32 = arith.constant 0 : i32
    %c0_i32_0 = arith.constant 0 : i32
    return %arg0, %c0_i32 : i32, i32
  }
  func.func @transform_2(%arg0: i32) -> (i32, i32) {
    %c0_i32 = arith.constant 0 : i32
    %c0_i32_0 = arith.constant 0 : i32
    %c0_i32_1 = arith.constant 0 : i32
    return %c0_i32, %c0_i32_0 : i32, i32
  }
  func.func @transform_3(%arg0: i32) -> (i32, i32) {
    %c0_i32 = arith.constant 0 : i32
    %c0_i32_0 = arith.constant 0 : i32
    return %arg0, %c0_i32 : i32, i32
  }
  func.func @transform_4(%arg0: i32) -> (i32, i32) {
    %c0_i32 = arith.constant 0 : i32
    %c0_i32_0 = arith.constant 0 : i32
    return %arg0, %c0_i32 : i32, i32
  }
}

</mosaic_0001>

<bundles_post_ra>
// kernel: tpu_custom_call.1
= control target key start
LH: loop header
LB: loop body
LE: loop exit
PB: predicated region body
PF: predicated region fallthrough
CT: control target
= control target key end

     0   :  { %10 = vsyncpa [#allocation3], 0  ;;  %s451_s0 = inlined_call_operand.hbm [shape: f32[2,128], index: 0, kind: input, shape index: {}]   ;;  %s452_s1 = inlined_call_operand.hbm [shape: f32[2,128], index: 1, kind: input, shape index: {}]   ;;  %s453_s2 = inlined_call_operand.hbm [shape: f32[14,128], index: 2, kind: input, shape index: {}]   ;;  %s454_s3 = inlined_call_operand.hbm [shape: f32[2,128], index: 3, kind: output, shape index: {0}]   ;;  %s455_s4 = inlined_call_operand.hbm [shape: f32[2,128], index: 4, kind: output, shape index: {1}]  }
   0x1   :  { %11 = vsyncpa [#allocation6], 0 }
   0x2   :  { %12 = vsyncpa [#allocation4], 0 }
   0x3   :  { %13 = vsyncpa [#allocation10], 0  ;;  %s351_s15 = smov [#allocation5]   ;;  %s352_s17 = smov [#allocation2]  }
   0x4   :  { %s30_s16 = sshll.u32 %s351_s15, 4  ;;  %s20_s18 = sshll.u32 %s352_s17, 4  ;;  %s31_s16 = int_to_ptr.vmem [resolvable:$true] %s30_s16  ;;  %s21_s18 = int_to_ptr.vmem [resolvable:$true] %s20_s18 }
   0x5   :  { %s233_s21 = scalar_lea.hbm %s452_s1, 32 }
   0x6   :  { %p234_p0 = scmp.ne.s32.totalorder %s452_s1, %s233_s21  ;;  %p237_p1 = scmp.lt.u32.totalorder %s233_s21, %s452_s1 }
   0x8   :  { %p239_p2 = pnand %p237_p1, %p234_p0 }
   0xa   :  { %242 = shalt.err (!%p239_p2)
}
   0xb   :  { %s243_s26 = scalar_lea.vmem %s31_s16, 32  ;;  %p248_p4 = scmp.lt.s32.totalorder %s31_s16, %s31_s16 }
   0xc   :  { %p244_p3 = scmp.ne.s32.totalorder %s31_s16, %s243_s26  ;;  %p249_p5 = scmp.lt.s32.totalorder %s243_s26, %s243_s26 }
   0xe   :  { %p250_p6 = por %p249_p5, %p248_p4 }
  0x10   :  { %p251_p7 = pnand %p250_p6, %p244_p3 }
  0x12   :  { %254 = shalt.err (!%p251_p7)
}
  0x13   :  { %33 = dma.hbm_to_vmem [thread:$0]  %s452_s1, 32, %s31_s16, [#allocation6]  }
  0x14   :  { %s255_s5 = scalar_lea.hbm %s451_s0, 32 }
  0x15   :  { %p256_p8 = scmp.ne.s32.totalorder %s451_s0, %s255_s5  ;;  %p259_p9 = scmp.lt.u32.totalorder %s255_s5, %s451_s0 }
  0x17   :  { %p261_p10 = pnand %p259_p9, %p256_p8 }
  0x19   :  { %264 = shalt.err (!%p261_p10)
}
  0x1a   :  { %s265_s10 = scalar_lea.vmem %s21_s18, 32  ;;  %p270_p12 = scmp.lt.s32.totalorder %s21_s18, %s21_s18 }
  0x1b   :  { %p266_p11 = scmp.ne.s32.totalorder %s21_s18, %s265_s10  ;;  %p271_p13 = scmp.lt.s32.totalorder %s265_s10, %s265_s10 }
  0x1d   :  { %p272_p0 = por %p271_p13, %p270_p12 }
  0x1f   :  { %p273_p1 = pnand %p272_p0, %p266_p11 }
  0x21   :  { %276 = shalt.err (!%p273_p1)
}
  0x22   :  { %23 = dma.hbm_to_vmem [thread:$0]  %s451_s0, 32, %s21_s18, [#allocation3]  }
  0x23   :  { %s353_s12 = smov [#allocation7]   ;;  %s277_s16 = scalar_lea.hbm %s453_s2, 256 }
  0x24   :  { %s39_s13 = sshll.u32 %s353_s12, 4  ;;  %p278_p2 = scmp.ne.s32.totalorder %s453_s2, %s277_s16  ;;  %s40_s13 = int_to_ptr.vmem [resolvable:$true] %s39_s13 }
  0x25   :  { %p281_p3 = scmp.lt.u32.totalorder %s277_s16, %s453_s2 }
  0x27   :  { %p283_p4 = pnand %p281_p3, %p278_p2 }
  0x29   :  { %286 = shalt.err (!%p283_p4)
}
  0x2a   :  { %s287_s22 = scalar_lea.vmem %s40_s13, 256  ;;  %p292_p6 = scmp.lt.s32.totalorder %s40_s13, %s40_s13 }
  0x2b   :  { %p288_p5 = scmp.ne.s32.totalorder %s40_s13, %s287_s22  ;;  %p293_p7 = scmp.lt.s32.totalorder %s287_s22, %s287_s22 }
  0x2d   :  { %p294_p8 = por %p293_p7, %p292_p6 }
  0x2f   :  { %p295_p9 = pnand %p294_p8, %p288_p5 }
  0x31   :  { %298 = shalt.err (!%p295_p9)
}
  0x32   :  { %s354_s0 = smov 128   ;;  %s355_s18 = smov 8  }
  0x33   :  { %45 = dma.hbm_to_vmem [thread:$0]  %s453_s2, 256, %s40_s13, [#allocation6], %s354_s0, %s354_s0, %s355_s18  }
  0x34   :  { %343 = dma.done.wait [#allocation3], 32  }
  0x35   :  { %344 = vsyncadd [#allocation3], 4294967264 }
  0x36   :  { %345 = dma.done.wait [#allocation6], 288  }
  0x37   :  { %346 = vsyncadd [#allocation6], 4294967008  ;;  %vm65_vm0 = vcmask 1041408   ;;  %v55_v0 = vld [vmem:[#allocation2] sm:$0x3]  ;;  %s356_s2 = smov [#allocation8]  }
  0x38   :  { %v215_v1 = vld [vmem:[#allocation7 + $0x1] ss:$0 sm:$0xff]  ;;  %v212_v2 = vld [vmem:[#allocation7] ss:$0 sm:$0xff]  ;;  %v216_v5 = vld [vmem:[#allocation7 + $0x5] ss:$0 sm:$0xff] }
  0x39   :  { %v92_v3 = vmul.f32 %v215_v1, %v55_v0  ;;  %v64_v4 = vmul.f32 %v212_v2, %v55_v0  ;;  %v213_v6 = vld [vmem:[#allocation7 + $0x4] ss:$0 sm:$0xff]  ;;  %v100_v7 = vmul.f32 %v216_v5, %v55_v0  ;;  %v219_v9 = vld [vmem:[#allocation7 + $0x6] ss:$0 sm:$0xff]  ;;  %v218_v10 = vld [vmem:[#allocation7 + $0x2] ss:$0 sm:$0xff] }
  0x3a   :  { %v73_v8 = vmul.f32 %v213_v6, %v55_v0  ;;  %v127_v15 = vmul.f32 %v219_v9, %v55_v0  ;;  %v119_v16 = vmul.f32 %v218_v10, %v55_v0  ;;  %v222_v17 = vld [vmem:[#allocation7 + $0x7] ss:$0 sm:$0xff]  ;;  %v221_v18 = vld [vmem:[#allocation7 + $0x3] ss:$0 sm:$0xff]  ;;  %v217_v27 = vld [vmem:[#allocation7 + $0x9] ss:$0 sm:$0xff] }
  0x3b   :  { %v93_v11 = vsel %vm65_vm0, %v92_v3, 0.0  ;;  %v66_v12 = vsel %vm65_vm0, %v64_v4, 0.0  ;;  %v101_v13 = vsel %vm65_vm0, %v100_v7, 0.0  ;;  %v154_v21 = vmul.f32 %v222_v17, %v55_v0  ;;  %v214_v28 = vld [vmem:[#allocation7 + $0x8] ss:$0 sm:$0xff]  ;;  %s188_s25 = sshll.u32 %s356_s2, 4  ;;  %s189_s25 = int_to_ptr.vmem [resolvable:$true] %s188_s25 }
  0x3c   :  { %94 = vadd.xlane.f32.xlu1 %v93_v11  ;;  %67 = vadd.xlane.f32.xlu0 %v66_v12  ;;  %v74_v14 = vsel %vm65_vm0, %v73_v8, 0.0  ;;  %v128_v19 = vsel %vm65_vm0, %v127_v15, 0.0  ;;  %v120_v20 = vsel %vm65_vm0, %v119_v16, 0.0  ;;  %v146_v22 = vmul.f32 %v221_v18, %v55_v0  ;;  %v220_v31 = vld [vmem:[#allocation7 + $0xa] ss:$0 sm:$0xff]  ;;  %s357_s26 = smov [#allocation9]   ;;  %p304_p11 = scmp.lt.s32.totalorder %s189_s25, %s189_s25 }
  0x3d   :  { %v155_v23 = vsel %vm65_vm0, %v154_v21, 0.0  ;;  %v223_v40 = vld [vmem:[#allocation7 + $0xb] ss:$0 sm:$0xff]  ;;  %v56_v49 = vld [vmem:[#allocation5] sm:$0x3]  ;;  %s198_s27 = sshll.u32 %s357_s26, 4  ;;  %s199_s27 = int_to_ptr.vmem [resolvable:$true] %s198_s27 }
  0x3e   :  { %v147_v24 = vsel %vm65_vm0, %v146_v22, 0.0  ;;  %v224_v52 = vld [vmem:[#allocation7 + $0xc] ss:$0 sm:$0xff]  ;;  %v225_v53 = vld [vmem:[#allocation7 + $0xd] ss:$0 sm:$0xff]  ;;  %s299_s28 = scalar_lea.vmem %s189_s25, 32 }
  0x3f   :  { %p300_p10 = scmp.ne.s32.totalorder %s189_s25, %s299_s28  ;;  %p305_p12 = scmp.lt.s32.totalorder %s299_s28, %s299_s28 }
  0x40   :  { %102 = vadd.xlane.f32.xlu1 %v101_v13  ;;  %75 = vadd.xlane.f32.xlu0 %v74_v14 }
  0x41   :  { %p306_p13 = por %p305_p12, %p304_p11 }
  0x43   :  { %p307_p0 = pnand %p306_p13, %p300_p10 }
  0x44   :  { %129 = vadd.xlane.f32.xlu1 %v128_v19  ;;  %121 = vadd.xlane.f32.xlu0 %v120_v20 }
  0x48   :  { %156 = vadd.xlane.f32.xlu1 %v155_v23  ;;  %148 = vadd.xlane.f32.xlu0 %v147_v24 }
  0xc9   :  { %v95_v25 = vpop.xlane.xlu1 %94  ;;  %v68_v26 = vpop.xlane.xlu0 %67 }
  0xca   :  { %v108_v32 = vmul.f32 %v217_v27, %v95_v25  ;;  %v81_v33 = vmul.f32 %v214_v28, %v68_v26 }
  0xcc   :  { %v109_v41 = vadd.f32 %v108_v32, %v81_v33 }
  0xcd   :  { %v103_v29 = vpop.xlane.xlu1 %102  ;;  %v76_v30 = vpop.xlane.xlu0 %75 }
  0xce   :  { %v110_v34 = vmul.f32 %v217_v27, %v103_v29  ;;  %v83_v35 = vmul.f32 %v214_v28, %v76_v30 }
  0xd0   :  { %v111_v42 = vadd.f32 %v110_v34, %v83_v35 }
  0xd1   :  { %v130_v36 = vpop.xlane.xlu1 %129  ;;  %v122_v37 = vpop.xlane.xlu0 %121 }
  0xd2   :  { %v137_v38 = vmul.f32 %v220_v31, %v130_v36  ;;  %v135_v39 = vmul.f32 %v220_v31, %v122_v37 }
  0xd4   :  { %v138_v45 = vadd.f32 %v137_v38, %v111_v42  ;;  %v136_v46 = vadd.f32 %v135_v39, %v109_v41 }
  0xd5   :  { %v157_v43 = vpop.xlane.xlu1 %156  ;;  %v149_v44 = vpop.xlane.xlu0 %148 }
  0xd6   :  { %v164_v47 = vmul.f32 %v223_v40, %v157_v43  ;;  %v162_v48 = vmul.f32 %v223_v40, %v149_v44 }
  0xd8   :  { %v165_v50 = vadd.f32 %v164_v47, %v138_v45  ;;  %v163_v51 = vadd.f32 %v162_v48, %v136_v46 }
  0xda   :  { %v175_v54 = vmul.f32 %v165_v50, %v56_v49  ;;  %v168_v55 = vmul.f32 %v163_v51, %v56_v49 }
  0xdc   :  { %v173_v56 = vadd.f32 %v224_v52, %v168_v55  ;;  %v180_v57 = vadd.f32 %v225_v53, %v175_v54 }
  0xde   :  { %174 = vst [vmem:[#allocation8] sm:$0x3] %v173_v56  ;;  %181 = vst [vmem:[#allocation9] sm:$0x3] %v180_v57 }
  0xdf   :  { %310 = shalt.err (!%p307_p0)
}
  0xe0   :  { %s311_s5 = scalar_lea.hbm %s454_s3, 32 }
  0xe1   :  { %p312_p1 = scmp.ne.s32.totalorder %s454_s3, %s311_s5  ;;  %p315_p2 = scmp.lt.u32.totalorder %s311_s5, %s454_s3 }
  0xe3   :  { %p317_p3 = pnand %p315_p2, %p312_p1 }
  0xe5   :  { %320 = shalt.err (!%p317_p3)
}
  0xe6   :  { %191 = dma.vmem_to_hbm [thread:$0]  %s189_s25, 32, %s454_s3, [#allocation4]  }
  0xe7   :  { %s321_s11 = scalar_lea.vmem %s199_s27, 32  ;;  %p326_p5 = scmp.lt.s32.totalorder %s199_s27, %s199_s27 }
  0xe8   :  { %p322_p4 = scmp.ne.s32.totalorder %s199_s27, %s321_s11  ;;  %p327_p6 = scmp.lt.s32.totalorder %s321_s11, %s321_s11 }
  0xea   :  { %p328_p7 = por %p327_p6, %p326_p5 }
  0xec   :  { %p329_p8 = pnand %p328_p7, %p322_p4 }
  0xee   :  { %332 = shalt.err (!%p329_p8)
}
  0xef   :  { %s333_s14 = scalar_lea.hbm %s455_s4, 32 }
  0xf0   :  { %p334_p9 = scmp.ne.s32.totalorder %s455_s4, %s333_s14  ;;  %p337_p10 = scmp.lt.u32.totalorder %s333_s14, %s455_s4 }
  0xf2   :  { %p339_p11 = pnand %p337_p10, %p334_p9 }
  0xf4   :  { %342 = shalt.err (!%p339_p11)
}
  0xf5   :  { %201 = dma.vmem_to_hbm [thread:$0]  %s199_s27, 32, %s455_s4, [#allocation10]  }
  0xf6   :  { %347 = dma.done.wait [#allocation4], 32  }
  0xf7   :  { %348 = vsyncadd [#allocation4], 4294967264 }
  0xf8   :  { %349 = dma.done.wait [#allocation10], 32  }
  0xf9   :  { %350 = vsyncadd [#allocation10], 4294967264 }
  0xfa   :  { %208 = vsyncpa [#allocation3], 1 }
  0xfb   :  { %209 = vsyncpa [#allocation6], 1 }
  0xfc   :  { %210 = vsyncpa [#allocation4], 1 }
  0xfd   :  { %211 = vsyncpa [#allocation10], 1 }

</bundles_post_ra>
